<compile_context>
chip_gen: v6e
topology: v6e:2x2x1
jax: 0.10.0
libtpu: 0.0.40
codegen_flags: <defaults>
</compile_context>

<pallas_src>
import jax
import jax.numpy as jnp
from jax.experimental import pallas as pl
from jax.experimental.pallas import tpu as pltpu


def _round_up(n, m):
    return ((n + m - 1) // m) * m


def deepfc_kernel(x_ref, w1_ref, b1_ref, w2_ref, b2_ref, w3_ref, b3_ref, out_ref):
    x = x_ref[...]                                                     # (tm, D)
    # Linear(D, 2D)                      (no activation, as in the reference)
    h = jnp.dot(x, w1_ref[...], preferred_element_type=jnp.float32) + b1_ref[...]
    # Linear(2D, 2D) + LeakyReLU(0.3)
    h = jnp.dot(h, w2_ref[...], preferred_element_type=jnp.float32) + b2_ref[...]
    h = jnp.where(h >= 0, h, 0.3 * h)
    # Linear(2D, Dout) + LeakyReLU(0.3)
    h = jnp.dot(h, w3_ref[...], preferred_element_type=jnp.float32) + b3_ref[...]
    out_ref[...] = jnp.where(h >= 0, h, 0.3 * h)


def run_deepfc(x, params, *, row_tile=512):
    """DeepFc forward.  `x` may have arbitrary leading dims; last dim = input_dim."""
    orig_shape = x.shape
    din = orig_shape[-1]
    dout = params['w3'].shape[1]

    # Fold all leading dims into the row axis (like nn.Linear does).
    x2d = x.reshape(-1, din).astype(jnp.float32)
    n = x2d.shape[0]

    # Row tile: multiple of the 8-row sublane height, capped at row_tile.
    tm = min(row_tile, _round_up(n, 8))
    n_pad = _round_up(n, tm)
    if n_pad != n:
        x2d = jnp.pad(x2d, ((0, n_pad - n), (0, 0)))

    weights = (params['w1'], params['b1'], params['w2'], params['b2'],
               params['w3'], params['b3'])

    def weight_spec(w):
        # Whole weight resident in VMEM for every grid step.
        return pl.BlockSpec(w.shape, lambda i, _nd=w.ndim: (0,) * _nd)

    out = pl.pallas_call(
        deepfc_kernel,
        out_shape=jax.ShapeDtypeStruct((n_pad, dout), jnp.float32),
        grid=(n_pad // tm,),
        in_specs=[pl.BlockSpec((tm, din), lambda i: (i, 0))]
                + [weight_spec(w) for w in weights],
        out_specs=pl.BlockSpec((tm, dout), lambda i: (i, 0)),
        compiler_params=pltpu.CompilerParams(
            # independent row tiles -> v7x can split the grid across its 2 TCs
            dimension_semantics=("parallel",)),
    )(x2d, *weights)

    out = out[:n]
    return out.reshape(orig_shape[:-1] + (dout,))


def init_deepfc_params(key, input_dim, output_dim):
    ks = jax.random.split(key, 6)
    s = 0.05

    def nrm(k, shape):
        return jax.random.normal(k, shape, jnp.float32) * s

    h = input_dim * 2
    return {
        'w1': nrm(ks[0], (input_dim, h)),  'b1': nrm(ks[1], (1, h)),
        'w2': nrm(ks[2], (h, h)),          'b2': nrm(ks[3], (1, h)),
        'w3': nrm(ks[4], (h, output_dim)), 'b3': nrm(ks[5], (1, output_dim)),
    }


def deepfc_reference(x, p):
    """Pure-JAX reference for correctness checking."""
    x2d = x.reshape(-1, x.shape[-1])
    h = x2d @ p['w1'] + p['b1']
    h = h @ p['w2'] + p['b2']
    h = jnp.where(h >= 0, h, 0.3 * h)
    h = h @ p['w3'] + p['b3']
    h = jnp.where(h >= 0, h, 0.3 * h)
    return h.reshape(x.shape[:-1] + (p['w3'].shape[1],))


if __name__ == "__main__":
    # DeepFc(input_dim=32, output_dim=32) applied to a (B, S, D) activation,
    # as in the HAFusion intraAFL pipeline (leading dims folded into rows).
    B, S, D = 2, 8, 32
    key = jax.random.PRNGKey(0)
    kx, kp = jax.random.split(key)

    x = jax.random.normal(kx, (B, S, D), jnp.float32)
    params = init_deepfc_params(kp, D, D)

    out = run_deepfc(x, params)
    jax.block_until_ready(out)

    ref = deepfc_reference(x, params)
    assert out.shape == (B, S, D) and out.dtype == jnp.float32
    assert jnp.allclose(out, ref, atol=1e-5, rtol=1e-5)
    # TODO(synk): self.output / out_feature() is host-side attribute caching,
    # not a device op; the wrapper simply returns the output instead.
    print("KERNEL_OK")
</pallas_src>

<mosaic_0001>
module attributes {stable_mosaic.version = 11 : i64} {
  func.func @deepfc_kernel(%arg0: i32, %arg1: memref<16x32xf32, #tpu.memory_space<vmem>>, %arg2: memref<32x64xf32, #tpu.memory_space<vmem>>, %arg3: memref<1x64xf32, #tpu.memory_space<vmem>>, %arg4: memref<64x64xf32, #tpu.memory_space<vmem>>, %arg5: memref<1x64xf32, #tpu.memory_space<vmem>>, %arg6: memref<64x32xf32, #tpu.memory_space<vmem>>, %arg7: memref<1x32xf32, #tpu.memory_space<vmem>>, %arg8: memref<16x32xf32, #tpu.memory_space<vmem>>) attributes {dimension_semantics = [#tpu.dimension_semantics<parallel>], iteration_bounds = array<i64: 1>, scalar_prefetch = 0 : i64, scratch_operands = 0 : i64, tpu.core_type = #tpu.core_type<tc>, window_params = [{transform_indices = @transform_0, window_bounds = array<i64: 16, 32>}, {pipeline_mode = #tpu.pipeline_mode<synchronous>, transform_indices = @transform_1, window_bounds = array<i64: 32, 64>}, {pipeline_mode = #tpu.pipeline_mode<synchronous>, transform_indices = @transform_2, window_bounds = array<i64: 1, 64>}, {pipeline_mode = #tpu.pipeline_mode<synchronous>, transform_indices = @transform_3, window_bounds = array<i64: 64, 64>}, {pipeline_mode = #tpu.pipeline_mode<synchronous>, transform_indices = @transform_4, window_bounds = array<i64: 1, 64>}, {pipeline_mode = #tpu.pipeline_mode<synchronous>, transform_indices = @transform_5, window_bounds = array<i64: 64, 32>}, {pipeline_mode = #tpu.pipeline_mode<synchronous>, transform_indices = @transform_6, window_bounds = array<i64: 1, 32>}, {transform_indices = @transform_7, window_bounds = array<i64: 16, 32>}]} {
    %c0 = arith.constant 0 : index
    %c0_0 = arith.constant 0 : index
    %0 = vector.load %arg1[%c0, %c0_0] : memref<16x32xf32, #tpu.memory_space<vmem>>, vector<16x32xf32>
    %c0_1 = arith.constant 0 : index
    %c0_2 = arith.constant 0 : index
    %1 = vector.load %arg2[%c0_1, %c0_2] : memref<32x64xf32, #tpu.memory_space<vmem>>, vector<32x64xf32>
    %cst = arith.constant dense<0.000000e+00> : vector<16x64xf32>
    %2 = tpu.matmul %0, %1, %cst {dimension_numbers = #tpu.dot_dimension_numbers<[1], [0], [0], [1], [0, 0, 1, 1], [], []>} : vector<16x32xf32>, vector<32x64xf32>, vector<16x64xf32> -> vector<16x64xf32>
    %c0_3 = arith.constant 0 : index
    %c0_4 = arith.constant 0 : index
    %3 = vector.load %arg3[%c0_3, %c0_4] : memref<1x64xf32, #tpu.memory_space<vmem>>, vector<1x64xf32>
    %4 = vector.broadcast %3 : vector<1x64xf32> to vector<16x64xf32>
    %5 = arith.addf %2, %4 : vector<16x64xf32>
    %c0_5 = arith.constant 0 : index
    %c0_6 = arith.constant 0 : index
    %6 = vector.load %arg4[%c0_5, %c0_6] : memref<64x64xf32, #tpu.memory_space<vmem>>, vector<64x64xf32>
    %cst_7 = arith.constant dense<0.000000e+00> : vector<16x64xf32>
    %7 = tpu.matmul %5, %6, %cst_7 {dimension_numbers = #tpu.dot_dimension_numbers<[1], [0], [0], [1], [0, 0, 1, 1], [], []>} : vector<16x64xf32>, vector<64x64xf32>, vector<16x64xf32> -> vector<16x64xf32>
    %c0_8 = arith.constant 0 : index
    %c0_9 = arith.constant 0 : index
    %8 = vector.load %arg5[%c0_8, %c0_9] : memref<1x64xf32, #tpu.memory_space<vmem>>, vector<1x64xf32>
    %9 = vector.broadcast %8 : vector<1x64xf32> to vector<16x64xf32>
    %10 = arith.addf %7, %9 : vector<16x64xf32>
    %cst_10 = arith.constant 0.000000e+00 : f32
    %11 = vector.broadcast %cst_10 : f32 to vector<16x64xf32>
    %12 = arith.cmpf oge, %10, %11 : vector<16x64xf32>
    %cst_11 = arith.constant 3.000000e-01 : f32
    %13 = vector.broadcast %cst_11 : f32 to vector<16x64xf32>
    %14 = arith.mulf %13, %10 : vector<16x64xf32>
    %15 = arith.select %12, %10, %14 : vector<16x64xi1>, vector<16x64xf32>
    %c0_12 = arith.constant 0 : index
    %c0_13 = arith.constant 0 : index
    %16 = vector.load %arg6[%c0_12, %c0_13] : memref<64x32xf32, #tpu.memory_space<vmem>>, vector<64x32xf32>
    %cst_14 = arith.constant dense<0.000000e+00> : vector<16x32xf32>
    %17 = tpu.matmul %15, %16, %cst_14 {dimension_numbers = #tpu.dot_dimension_numbers<[1], [0], [0], [1], [0, 0, 1, 1], [], []>} : vector<16x64xf32>, vector<64x32xf32>, vector<16x32xf32> -> vector<16x32xf32>
    %c0_15 = arith.constant 0 : index
    %c0_16 = arith.constant 0 : index
    %18 = vector.load %arg7[%c0_15, %c0_16] : memref<1x32xf32, #tpu.memory_space<vmem>>, vector<1x32xf32>
    %19 = vector.broadcast %18 : vector<1x32xf32> to vector<16x32xf32>
    %20 = arith.addf %17, %19 : vector<16x32xf32>
    %cst_17 = arith.constant 0.000000e+00 : f32
    %21 = vector.broadcast %cst_17 : f32 to vector<16x32xf32>
    %22 = arith.cmpf oge, %20, %21 : vector<16x32xf32>
    %cst_18 = arith.constant 3.000000e-01 : f32
    %23 = vector.broadcast %cst_18 : f32 to vector<16x32xf32>
    %24 = arith.mulf %23, %20 : vector<16x32xf32>
    %25 = arith.select %22, %20, %24 : vector<16x32xi1>, vector<16x32xf32>
    %c0_19 = arith.constant 0 : index
    %c0_20 = arith.constant 0 : index
    %26 = vector.load %arg8[%c0_19, %c0_20] : memref<16x32xf32, #tpu.memory_space<vmem>>, vector<16x32xf32>
    tpu.vector_store %arg8[%c0_19, %c0_20], %25 {strides = array<i32>} : memref<16x32xf32, #tpu.memory_space<vmem>>, vector<16x32xf32>,
    return
  }
  func.func @transform_0(%arg0: i32) -> (i32, i32) {
    %c0_i32 = arith.constant 0 : i32
    %c0_i32_0 = arith.constant 0 : i32
    return %arg0, %c0_i32 : i32, i32
  }
  func.func @transform_1(%arg0: i32) -> (i32, i32) {
    %c0_i32 = arith.constant 0 : i32
    %c0_i32_0 = arith.constant 0 : i32
    %c0_i32_1 = arith.constant 0 : i32
    return %c0_i32, %c0_i32_0 : i32, i32
  }
  func.func @transform_2(%arg0: i32) -> (i32, i32) {
    %c0_i32 = arith.constant 0 : i32
    %c0_i32_0 = arith.constant 0 : i32
    %c0_i32_1 = arith.constant 0 : i32
    return %c0_i32, %c0_i32_0 : i32, i32
  }
  func.func @transform_3(%arg0: i32) -> (i32, i32) {
    %c0_i32 = arith.constant 0 : i32
    %c0_i32_0 = arith.constant 0 : i32
    %c0_i32_1 = arith.constant 0 : i32
    return %c0_i32, %c0_i32_0 : i32, i32
  }
  func.func @transform_4(%arg0: i32) -> (i32, i32) {
    %c0_i32 = arith.constant 0 : i32
    %c0_i32_0 = arith.constant 0 : i32
    %c0_i32_1 = arith.constant 0 : i32
    return %c0_i32, %c0_i32_0 : i32, i32
  }
  func.func @transform_5(%arg0: i32) -> (i32, i32) {
    %c0_i32 = arith.constant 0 : i32
    %c0_i32_0 = arith.constant 0 : i32
    %c0_i32_1 = arith.constant 0 : i32
    return %c0_i32, %c0_i32_0 : i32, i32
  }
  func.func @transform_6(%arg0: i32) -> (i32, i32) {
    %c0_i32 = arith.constant 0 : i32
    %c0_i32_0 = arith.constant 0 : i32
    %c0_i32_1 = arith.constant 0 : i32
    return %c0_i32, %c0_i32_0 : i32, i32
  }
  func.func @transform_7(%arg0: i32) -> (i32, i32) {
    %c0_i32 = arith.constant 0 : i32
    %c0_i32_0 = arith.constant 0 : i32
    return %arg0, %c0_i32 : i32, i32
  }
}

</mosaic_0001>

<bundles_post_ra>
// kernel: tpu_custom_call.1
= control target key start
LH: loop header
LB: loop body
LE: loop exit
PB: predicated region body
PF: predicated region fallthrough
CT: control target
= control target key end

     0   :  { %12 = vsyncpa [#allocation3], 0  ;;  %s625_s0 = inlined_call_operand.hbm [shape: f32[16,32], index: 0, kind: input, shape index: {}]   ;;  %s626_s1 = inlined_call_operand.vmem [shape: f32[32,64], index: 1, kind: input, shape index: {}]   ;;  %s627_s2 = inlined_call_operand.vmem [shape: f32[1,64], index: 2, kind: input, shape index: {}]   ;;  %s628_s3 = inlined_call_operand.vmem [shape: f32[64,64], index: 3, kind: input, shape index: {}]   ;;  %s629_s4 = inlined_call_operand.vmem [shape: f32[1,64], index: 4, kind: input, shape index: {}]   ;;  %s630_s5 = inlined_call_operand.vmem [shape: f32[64,32], index: 5, kind: input, shape index: {}]   ;;  %s631_s6 = inlined_call_operand.vmem [shape: f32[1,32], index: 6, kind: input, shape index: {}]   ;;  %s632_s7 = inlined_call_operand.hbm [shape: f32[16,32], index: 7, kind: output, shape index: {}]  }
   0x1   :  { %13 = vsyncpa [#allocation4], 0  ;;  %s492_s24 = smov [#allocation2]  }
   0x2   :  { %s19_s25 = sshll.u32 %s492_s24, 4  ;;  %s20_s25 = int_to_ptr.vmem [resolvable:$true] %s19_s25 }
   0x3   :  { %s456_s26 = scalar_lea.vmem %s20_s25, 256  ;;  %p461_p1 = scmp.lt.s32.totalorder %s20_s25, %s20_s25 }
   0x4   :  { %p457_p0 = scmp.ne.s32.totalorder %s20_s25, %s456_s26  ;;  %p462_p2 = scmp.lt.s32.totalorder %s456_s26, %s456_s26 }
   0x6   :  { %p463_p3 = por %p462_p2, %p461_p1 }
   0x8   :  { %p464_p4 = pnand %p463_p3, %p457_p0 }
   0xa   :  { %467 = shalt.err (!%p464_p4)
}
   0xb   :  { %s493_s27 = smov 128   ;;  %s494_s28 = smov 8  }
   0xc   :  { %25 = dma.hbm_to_vmem [thread:$0]  %s625_s0, 256, %s20_s25, [#allocation3], %s493_s27, %s493_s27, %s494_s28  }
   0xd   :  { %488 = dma.done.wait [#allocation3], 256  }
   0xe   :  { %489 = vsyncadd [#allocation3], 4294967040  ;;  %vm54_vm0 = vcmask 261120   ;;  %v46_v0 = vld [vmem:[%s626_s1 + $0x18] sm:$0xff]  ;;  %v45_v1 = vld [vmem:[%s626_s1 + $0x10] sm:$0xff]  ;;  %vm151_vm1 = vcmask 523264  }
   0xf   :  { %395 = vmatprep.subr.mxu0 %v46_v0  ;;  %v41_v2 = vld [vmem:[#allocation2] sm:$0xff]  ;;  %v44_v3 = vld [vmem:[%s626_s1 + $0x8] sm:$0xff]  ;;  %v143_v4 = vld [vmem:[%s628_s3 + $0x38] sm:$0xff] }
  0x10   :  { %396 = vmatpush3.msra.mxu0 %v46_v0  ;;  %403 = vmatprep.mubr.msk.f32.mxu0 %vm54_vm0, %v41_v2  ;;  %v142_v5 = vld [vmem:[%s628_s3 + $0x30] sm:$0xff]  ;;  %v43_v6 = vld [vmem:[%s626_s1] sm:$0xff]  ;;  %v141_v7 = vld [vmem:[%s628_s3 + $0x28] sm:$0xff] }
  0x11   :  { %397 = vmatprep.subr.mxu0 %v45_v1  ;;  %406 = vmatprep.subr.mxu1 %v143_v4  ;;  %v42_v8 = vld [vmem:[#allocation2 + $0x8] sm:$0xff]  ;;  %v140_v9 = vld [vmem:[%s628_s3 + $0x20] sm:$0xff]  ;;  %v139_v10 = vld [vmem:[%s628_s3 + $0x18] sm:$0xff] }
  0x12   :  { %398 = vmatpush3.msra.mxu0 %v45_v1  ;;  %407 = vmatpush3.msra.mxu1 %v143_v4  ;;  %v138_v11 = vld [vmem:[%s628_s3 + $0x10] sm:$0xff]  ;;  %v137_v12 = vld [vmem:[%s628_s3 + $0x8] sm:$0xff]  ;;  %v136_v13 = vld [vmem:[%s628_s3] sm:$0xff] }
  0x13   :  { %399 = vmatprep.subr.mxu0 %v44_v3  ;;  %408 = vmatprep.subr.mxu1 %v142_v5  ;;  %v246_v14 = vld [vmem:[%s630_s5 + $0x38] sm:$0xff]  ;;  %v245_v15 = vld [vmem:[%s630_s5 + $0x30] sm:$0xff]  ;;  %v244_v16 = vld [vmem:[%s630_s5 + $0x28] sm:$0xff] }
  0x14   :  { %400 = vmatpush3.msra.mxu0 %v44_v3  ;;  %409 = vmatpush3.msra.mxu1 %v142_v5  ;;  %v243_v17 = vld [vmem:[%s630_s5 + $0x20] sm:$0xff]  ;;  %v242_v23 = vld [vmem:[%s630_s5 + $0x18] sm:$0xff]  ;;  %v241_v24 = vld [vmem:[%s630_s5 + $0x10] sm:$0xff] }
  0x15   :  { %401 = vmatprep.subr.mxu0 %v43_v6  ;;  %410 = vmatprep.subr.mxu1 %v141_v7  ;;  %v360_v19 = vld [vmem:[%s627_s2] ss:$0 sm:$0xff]  ;;  %v240_v25 = vld [vmem:[%s630_s5 + $0x8] sm:$0xff] }
  0x16   :  { %402 = vmatpush3.msra.mxu0 %v43_v6  ;;  %411 = vmatpush3.msra.mxu1 %v141_v7  ;;  %v239_v26 = vld [vmem:[%s630_s5] sm:$0xff] }
  0x17   :  { %404 = vmatmul.mubr.msk.f32.vlgmr.msra.gmra.mxu0 %vm54_vm0, %v42_v8  ;;  %412 = vmatprep.subr.mxu1 %v140_v9  ;;  %v363_v27 = vld [vmem:[%s629_s4] ss:$0 sm:$0xff]  ;;  %s495_s4 = smov [#allocation5]  }
  0x18   :  { %413 = vmatpush3.msra.mxu1 %v140_v9  ;;  %425 = vmatprep.subr.mxu0 %v246_v14  ;;  %v366_v36 = vld [vmem:[%s631_s6] ss:$0 sm:$0xff]  ;;  %s348_s26 = sshll.u32 %s495_s4, 4  ;;  %s349_s26 = int_to_ptr.vmem [resolvable:$true] %s348_s26 }
  0x19   :  { %414 = vmatprep.subr.mxu1 %v139_v10  ;;  %426 = vmatpush3.msra.mxu0 %v246_v14  ;;  %s468_s29 = scalar_lea.vmem %s349_s26, 256  ;;  %p473_p6 = scmp.lt.s32.totalorder %s349_s26, %s349_s26 }
  0x1a   :  { %415 = vmatpush3.msra.mxu1 %v139_v10  ;;  %427 = vmatprep.subr.mxu0 %v245_v15  ;;  %p469_p5 = scmp.ne.s32.totalorder %s349_s26, %s468_s29  ;;  %p474_p7 = scmp.lt.s32.totalorder %s468_s29, %s468_s29 }
  0x1b   :  { %416 = vmatprep.subr.mxu1 %v138_v11  ;;  %428 = vmatpush3.msra.mxu0 %v245_v15 }
  0x1c   :  { %417 = vmatpush3.msra.mxu1 %v138_v11  ;;  %429 = vmatprep.subr.mxu0 %v244_v16  ;;  %p475_p8 = por %p474_p7, %p473_p6 }
  0x1d   :  { %418 = vmatprep.subr.mxu1 %v137_v12  ;;  %430 = vmatpush3.msra.mxu0 %v244_v16 }
  0x1e   :  { %419 = vmatpush3.msra.mxu1 %v137_v12  ;;  %431 = vmatprep.subr.mxu0 %v243_v17  ;;  %p476_p9 = pnand %p475_p8, %p469_p5 }
  0x1f   :  { %420 = vmatprep.subr.mxu1 %v136_v13  ;;  %432 = vmatpush3.msra.mxu0 %v243_v17 }
  0x20   :  { %421 = vmatpush3.msra.mxu1 %v136_v13  ;;  %433 = vmatprep.subr.mxu0 %v242_v23 }
  0x21   :  { %434 = vmatpush3.msra.mxu0 %v242_v23 }
  0x22   :  { %435 = vmatprep.subr.mxu0 %v241_v24 }
  0x23   :  { %436 = vmatpush3.msra.mxu0 %v241_v24 }
  0x24   :  { %437 = vmatprep.subr.mxu0 %v240_v25 }
  0x25   :  { %438 = vmatpush3.msra.mxu0 %v240_v25 }
  0x26   :  { %439 = vmatprep.subr.mxu0 %v239_v26 }
  0x27   :  { %440 = vmatpush3.msra.mxu0 %v239_v26 }
  0xd7   :  { %v405_v18 = vpop.f32.mrf.mxu0 }
  0xd8   :  { %v133_v22 = vadd.f32 %v405_v18, %v360_v19 }
  0xd9   :  { %v127_v20 = vpop.f32.mrf.mxu0 }
  0xda   :  { %v128_v21 = vadd.f32 %v360_v19, %v127_v20 }
  0xdc   :  { %422 = vmatprep.mubr.msk.f32.mxu1 %vm151_vm1, %v128_v21 }
  0xdd   :  { %423 = vmatmul.mubr.msk.f32.vlgmr.msra.gmra.mxu1 %vm151_vm1, %v133_v22 }
 0x19d   :  { %v424_v28 = vpop.f32.mrf.mxu1 }
 0x19e   :  { %v230_v29 = vadd.f32 %v424_v28, %v363_v27 }
 0x19f   :  { %v224_v30 = vpop.f32.mrf.mxu1 }
 0x1a0   :  { %v225_v31 = vadd.f32 %v363_v27, %v224_v30  ;;  %v236_v32 = vmul.f32 0.3, %v230_v29  ;;  %vm234_vm2 = vcmp.ge.f32.partialorder %v230_v29, 0.0 }
 0x1a2   :  { %vm233_vm3 = vcmp.ge.f32.partialorder %v225_v31, 0.0  ;;  %v235_v33 = vmul.f32 0.3, %v225_v31  ;;  %v238_v35 = vsel %vm234_vm2, %v230_v29, %v236_v32 }
 0x1a4   :  { %v237_v34 = vsel %vm233_vm3, %v225_v31, %v235_v33 }
 0x1a5   :  { %441 = vmatprep.mubr.msk.f32.mxu0 %vm151_vm1, %v237_v34 }
 0x1a6   :  { %442 = vmatmul.mubr.msk.f32.vlgmr.msra.gmra.mxu0 %vm151_vm1, %v238_v35 }
 0x266   :  { %v443_v37 = vpop.f32.mrf.mxu0 }
 0x267   :  { %v332_v38 = vadd.f32 %v443_v37, %v366_v36 }
 0x268   :  { %v326_v39 = vpop.f32.mrf.mxu0 }
 0x269   :  { %vm336_vm4 = vcmp.ge.f32.partialorder %v332_v38, 0.0  ;;  %v338_v40 = vmul.f32 0.3, %v332_v38  ;;  %v327_v41 = vadd.f32 %v366_v36, %v326_v39 }
 0x26b   :  { %v340_v42 = vsel %vm336_vm4, %v332_v38, %v338_v40  ;;  %vm335_vm5 = vcmp.ge.f32.partialorder %v327_v41, 0.0  ;;  %v337_v43 = vmul.f32 0.3, %v327_v41 }
 0x26c   :  { %342 = vst.msk [vmem:[#allocation5 + $0x8] sm:$0xff] %vm54_vm0, %v340_v42 }
 0x26d   :  { %v339_v44 = vsel %vm335_vm5, %v327_v41, %v337_v43 }
 0x26e   :  { %341 = vst.msk [vmem:[#allocation5] sm:$0xff] %vm54_vm0, %v339_v44 }
 0x26f   :  { %479 = shalt.err (!%p476_p9)
}
 0x270   :  { %354 = dma.vmem_to_hbm [thread:$0]  %s349_s26, 256, %s632_s7, [#allocation4], %s493_s27, %s493_s27, %s494_s28  }
 0x271   :  { %490 = dma.done.wait [#allocation4], 256  }
 0x272   :  { %491 = vsyncadd [#allocation4], 4294967040 }
 0x273   :  { %358 = vsyncpa [#allocation3], 1 }
 0x274   :  { %359 = vsyncpa [#allocation4], 1 }

</bundles_post_ra>
